<compile_context>
chip_gen: v6e
topology: v6e:2x2x1
jax: 0.10.0
libtpu: 0.0.40
codegen_flags: <defaults>
</compile_context>

<pallas_src>
import jax
import jax.numpy as jnp
from jax.experimental import pallas as pl
from jax.experimental.pallas import tpu as pltpu


def _round_up(x, m):
    return (x + m - 1) // m * m


def dqn_kernel(x_ref, w1_ref, b1_ref, w2_ref, b2_ref, w3_ref, b3_ref, o_ref):
    # fc1 + ReLU  (MXU matmul, f32 accumulate; bias/ReLU stay f32 on the VPU)
    h1 = jnp.dot(x_ref[...], w1_ref[...], preferred_element_type=jnp.float32)
    h1 = jnp.maximum(h1 + b1_ref[...], 0.0)
    # fc2 + ReLU  (cast back to the weight operand dtype for the MXU)
    h2 = jnp.dot(h1.astype(w2_ref.dtype), w2_ref[...],
                 preferred_element_type=jnp.float32)
    h2 = jnp.maximum(h2 + b2_ref[...], 0.0)
    # fc3 (no activation -> q-values), lane-dense (>=128-wide) store
    q = jnp.dot(h2.astype(w3_ref.dtype), w3_ref[...],
                preferred_element_type=jnp.float32)
    o_ref[...] = (q + b3_ref[...]).astype(o_ref.dtype)


def dqn_forward(x, params, *, tm=None, use_bf16=True):
    """x: [N, input_dim] float32. params: dict of w1,b1,w2,b2,w3,b3."""
    w1, b1 = params["w1"], params["b1"]
    w2, b2 = params["w2"], params["b2"]
    w3, b3 = params["w3"], params["b3"]

    N, in_dim = x.shape
    hid = w1.shape[1]
    out_dim = w3.shape[1]

    # ---- row-tile selection (previous tm=8 starved the MXU / overhead-bound)
    if tm is None:
        if N >= 512:
            tm = 256                                 # big batch: 256-row tiles
        elif N >= 16:
            tm = _round_up(pl.cdiv(N, 2), 8)         # >=2 steps -> v7x 2nd TC
        else:
            tm = _round_up(max(N, 1), 8)             # tiny demo: one step
    n_pad = _round_up(N, tm)

    # ---- lane-dense output: pad q-value width up to a multiple of 128 ------
    out_pad = _round_up(out_dim, 128)

    # ---- operand dtype: bf16 for MXU inputs, f32 biases / accumulation -----
    op_dtype = jnp.bfloat16 if use_bf16 else jnp.float32
    xk = x.astype(op_dtype)
    if n_pad != N:
        xk = jnp.pad(xk, ((0, n_pad - N), (0, 0)))
    w1k = w1.astype(op_dtype)
    w2k = w2.astype(op_dtype)
    w3k = jnp.pad(w3, ((0, 0), (0, out_pad - out_dim))).astype(op_dtype)
    b1k = b1.astype(jnp.float32)
    b2k = b2.astype(jnp.float32)
    b3k = jnp.pad(b3, ((0, 0), (0, out_pad - out_dim))).astype(jnp.float32)

    grid = (n_pad // tm,)

    flops = 2 * n_pad * (in_dim * hid + hid * hid + hid * out_pad)
    bytes_accessed = (
        xk.size * xk.dtype.itemsize
        + n_pad * out_pad * 4
        + sum(a.size * a.dtype.itemsize for a in (w1k, b1k, w2k, b2k, w3k, b3k))
    )

    out = pl.pallas_call(
        dqn_kernel,
        out_shape=jax.ShapeDtypeStruct((n_pad, out_pad), jnp.float32),
        grid=grid,
        in_specs=[
            # activations: tile over rows, full feature width
            pl.BlockSpec((tm, in_dim), lambda i: (i, 0)),
            # weights / biases: constant block -> resident across all steps
            pl.BlockSpec((in_dim, hid), lambda i: (0, 0)),
            pl.BlockSpec((1, hid), lambda i: (0, 0)),
            pl.BlockSpec((hid, hid), lambda i: (0, 0)),
            pl.BlockSpec((1, hid), lambda i: (0, 0)),
            pl.BlockSpec((hid, out_pad), lambda i: (0, 0)),
            pl.BlockSpec((1, out_pad), lambda i: (0, 0)),
        ],
        out_specs=pl.BlockSpec((tm, out_pad), lambda i: (i, 0)),
        compiler_params=pltpu.CompilerParams(
            dimension_semantics=("parallel",)),
        cost_estimate=pl.CostEstimate(
            flops=flops, transcendentals=0, bytes_accessed=bytes_accessed),
    )(xk, w1k, b1k, w2k, b2k, w3k, b3k)

    # strip row / q-value padding
    return out[:N, :out_dim]


def init_params(key, input_dim, hidden_dim, output_dim):
    """Deterministic synthetic init (uniform like nn.Linear default)."""
    ks = jax.random.split(key, 6)

    def lin(kw, kb, fan_in, fan_out):
        bound = 1.0 / jnp.sqrt(fan_in)
        w = jax.random.uniform(kw, (fan_in, fan_out), jnp.float32, -bound, bound)
        b = jax.random.uniform(kb, (1, fan_out), jnp.float32, -bound, bound)
        return w, b

    w1, b1 = lin(ks[0], ks[1], input_dim, hidden_dim)
    w2, b2 = lin(ks[2], ks[3], hidden_dim, hidden_dim)
    w3, b3 = lin(ks[4], ks[5], hidden_dim, output_dim)
    return {"w1": w1, "b1": b1, "w2": w2, "b2": b2, "w3": w3, "b3": b3}


def dqn_reference(x, p):
    h1 = jnp.maximum(x @ p["w1"] + p["b1"], 0.0)
    h2 = jnp.maximum(h1 @ p["w2"] + p["b2"], 0.0)
    return h2 @ p["w3"] + p["b3"]


if __name__ == "__main__":
    # Shapes consistent with the module: input_dim from data.x.size(1),
    # hidden_dim = output_dim = 64. Small batch of graph-node feature rows.
    N, INPUT_DIM, HIDDEN_DIM, OUTPUT_DIM = 8, 32, 64, 64

    key = jax.random.PRNGKey(0)
    k_x, k_p = jax.random.split(key)
    x = jax.random.normal(k_x, (N, INPUT_DIM), jnp.float32)
    params = init_params(k_p, INPUT_DIM, HIDDEN_DIM, OUTPUT_DIM)

    # bf16-operand fast path (looser tolerance vs. the f32 reference)
    q_values = jax.block_until_ready(dqn_forward(x, params))
    ref = dqn_reference(x, params)
    assert q_values.shape == (N, OUTPUT_DIM)
    assert jnp.allclose(q_values, ref, atol=5e-2, rtol=5e-2)

    # exact f32-operand path: verifies kernel semantics match PyTorch forward
    q_f32 = jax.block_until_ready(dqn_forward(x, params, use_bf16=False))
    assert jnp.allclose(q_f32, ref, atol=1e-5, rtol=1e-5)

    # non-tile-multiple batch: exercises row padding + a >=2-step parallel grid
    x2 = jax.random.normal(jax.random.PRNGKey(1), (40, INPUT_DIM), jnp.float32)
    q2 = jax.block_until_ready(dqn_forward(x2, params, use_bf16=False))
    assert q2.shape == (40, OUTPUT_DIM)
    assert jnp.allclose(q2, dqn_reference(x2, params), atol=1e-5, rtol=1e-5)

    print("KERNEL_OK")
</pallas_src>

<mosaic_0001>
module attributes {stable_mosaic.version = 11 : i64} {
  func.func @dqn_kernel(%arg0: i32, %arg1: memref<8x32xbf16, #tpu.memory_space<vmem>>, %arg2: memref<32x64xbf16, #tpu.memory_space<vmem>>, %arg3: memref<1x64xf32, #tpu.memory_space<vmem>>, %arg4: memref<64x64xbf16, #tpu.memory_space<vmem>>, %arg5: memref<1x64xf32, #tpu.memory_space<vmem>>, %arg6: memref<64x128xbf16, #tpu.memory_space<vmem>>, %arg7: memref<1x128xf32, #tpu.memory_space<vmem>>, %arg8: memref<8x128xf32, #tpu.memory_space<vmem>>) attributes {dimension_semantics = [#tpu.dimension_semantics<parallel>], iteration_bounds = array<i64: 1>, scalar_prefetch = 0 : i64, scratch_operands = 0 : i64, tpu.core_type = #tpu.core_type<tc>, window_params = [{transform_indices = @transform_0, window_bounds = array<i64: 8, 32>}, {pipeline_mode = #tpu.pipeline_mode<synchronous>, transform_indices = @transform_1, window_bounds = array<i64: 32, 64>}, {pipeline_mode = #tpu.pipeline_mode<synchronous>, transform_indices = @transform_2, window_bounds = array<i64: 1, 64>}, {pipeline_mode = #tpu.pipeline_mode<synchronous>, transform_indices = @transform_3, window_bounds = array<i64: 64, 64>}, {pipeline_mode = #tpu.pipeline_mode<synchronous>, transform_indices = @transform_4, window_bounds = array<i64: 1, 64>}, {pipeline_mode = #tpu.pipeline_mode<synchronous>, transform_indices = @transform_5, window_bounds = array<i64: 64, 128>}, {pipeline_mode = #tpu.pipeline_mode<synchronous>, transform_indices = @transform_6, window_bounds = array<i64: 1, 128>}, {transform_indices = @transform_7, window_bounds = array<i64: 8, 128>}]} {
    %c0 = arith.constant 0 : index
    %c0_0 = arith.constant 0 : index
    %0 = vector.load %arg1[%c0, %c0_0] : memref<8x32xbf16, #tpu.memory_space<vmem>>, vector<8x32xbf16>
    %c0_1 = arith.constant 0 : index
    %c0_2 = arith.constant 0 : index
    %1 = vector.load %arg2[%c0_1, %c0_2] : memref<32x64xbf16, #tpu.memory_space<vmem>>, vector<32x64xbf16>
    %cst = arith.constant dense<0.000000e+00> : vector<8x64xf32>
    %2 = tpu.matmul %0, %1, %cst {dimension_numbers = #tpu.dot_dimension_numbers<[1], [0], [0], [1], [0, 0, 1, 1], [], []>} : vector<8x32xbf16>, vector<32x64xbf16>, vector<8x64xf32> -> vector<8x64xf32>
    %c0_3 = arith.constant 0 : index
    %c0_4 = arith.constant 0 : index
    %3 = vector.load %arg3[%c0_3, %c0_4] : memref<1x64xf32, #tpu.memory_space<vmem>>, vector<1x64xf32>
    %4 = vector.broadcast %3 : vector<1x64xf32> to vector<8x64xf32>
    %5 = arith.addf %2, %4 : vector<8x64xf32>
    %cst_5 = arith.constant 0.000000e+00 : f32
    %6 = vector.broadcast %cst_5 : f32 to vector<8x64xf32>
    %7 = arith.maximumf %5, %6 : vector<8x64xf32>
    %8 = arith.truncf %7 : vector<8x64xf32> to vector<8x64xbf16>
    %c0_6 = arith.constant 0 : index
    %c0_7 = arith.constant 0 : index
    %9 = vector.load %arg4[%c0_6, %c0_7] : memref<64x64xbf16, #tpu.memory_space<vmem>>, vector<64x64xbf16>
    %cst_8 = arith.constant dense<0.000000e+00> : vector<8x64xf32>
    %10 = tpu.matmul %8, %9, %cst_8 {dimension_numbers = #tpu.dot_dimension_numbers<[1], [0], [0], [1], [0, 0, 1, 1], [], []>} : vector<8x64xbf16>, vector<64x64xbf16>, vector<8x64xf32> -> vector<8x64xf32>
    %c0_9 = arith.constant 0 : index
    %c0_10 = arith.constant 0 : index
    %11 = vector.load %arg5[%c0_9, %c0_10] : memref<1x64xf32, #tpu.memory_space<vmem>>, vector<1x64xf32>
    %12 = vector.broadcast %11 : vector<1x64xf32> to vector<8x64xf32>
    %13 = arith.addf %10, %12 : vector<8x64xf32>
    %cst_11 = arith.constant 0.000000e+00 : f32
    %14 = vector.broadcast %cst_11 : f32 to vector<8x64xf32>
    %15 = arith.maximumf %13, %14 : vector<8x64xf32>
    %16 = arith.truncf %15 : vector<8x64xf32> to vector<8x64xbf16>
    %c0_12 = arith.constant 0 : index
    %c0_13 = arith.constant 0 : index
    %17 = vector.load %arg6[%c0_12, %c0_13] : memref<64x128xbf16, #tpu.memory_space<vmem>>, vector<64x128xbf16>
    %cst_14 = arith.constant dense<0.000000e+00> : vector<8x128xf32>
    %18 = tpu.matmul %16, %17, %cst_14 {dimension_numbers = #tpu.dot_dimension_numbers<[1], [0], [0], [1], [0, 0, 1, 1], [], []>} : vector<8x64xbf16>, vector<64x128xbf16>, vector<8x128xf32> -> vector<8x128xf32>
    %c0_15 = arith.constant 0 : index
    %c0_16 = arith.constant 0 : index
    %19 = vector.load %arg7[%c0_15, %c0_16] : memref<1x128xf32, #tpu.memory_space<vmem>>, vector<1x128xf32>
    %20 = vector.broadcast %19 : vector<1x128xf32> to vector<8x128xf32>
    %21 = arith.addf %18, %20 : vector<8x128xf32>
    %c0_17 = arith.constant 0 : index
    %c0_18 = arith.constant 0 : index
    %22 = vector.load %arg8[%c0_17, %c0_18] : memref<8x128xf32, #tpu.memory_space<vmem>>, vector<8x128xf32>
    tpu.vector_store %arg8[%c0_17, %c0_18], %21 {strides = array<i32>} : memref<8x128xf32, #tpu.memory_space<vmem>>, vector<8x128xf32>,
    return
  }
  func.func @transform_0(%arg0: i32) -> (i32, i32) {
    %c0_i32 = arith.constant 0 : i32
    %c0_i32_0 = arith.constant 0 : i32
    return %arg0, %c0_i32 : i32, i32
  }
  func.func @transform_1(%arg0: i32) -> (i32, i32) {
    %c0_i32 = arith.constant 0 : i32
    %c0_i32_0 = arith.constant 0 : i32
    %c0_i32_1 = arith.constant 0 : i32
    return %c0_i32, %c0_i32_0 : i32, i32
  }
  func.func @transform_2(%arg0: i32) -> (i32, i32) {
    %c0_i32 = arith.constant 0 : i32
    %c0_i32_0 = arith.constant 0 : i32
    %c0_i32_1 = arith.constant 0 : i32
    return %c0_i32, %c0_i32_0 : i32, i32
  }
  func.func @transform_3(%arg0: i32) -> (i32, i32) {
    %c0_i32 = arith.constant 0 : i32
    %c0_i32_0 = arith.constant 0 : i32
    %c0_i32_1 = arith.constant 0 : i32
    return %c0_i32, %c0_i32_0 : i32, i32
  }
  func.func @transform_4(%arg0: i32) -> (i32, i32) {
    %c0_i32 = arith.constant 0 : i32
    %c0_i32_0 = arith.constant 0 : i32
    %c0_i32_1 = arith.constant 0 : i32
    return %c0_i32, %c0_i32_0 : i32, i32
  }
  func.func @transform_5(%arg0: i32) -> (i32, i32) {
    %c0_i32 = arith.constant 0 : i32
    %c0_i32_0 = arith.constant 0 : i32
    %c0_i32_1 = arith.constant 0 : i32
    return %c0_i32, %c0_i32_0 : i32, i32
  }
  func.func @transform_6(%arg0: i32) -> (i32, i32) {
    %c0_i32 = arith.constant 0 : i32
    %c0_i32_0 = arith.constant 0 : i32
    %c0_i32_1 = arith.constant 0 : i32
    return %c0_i32, %c0_i32_0 : i32, i32
  }
  func.func @transform_7(%arg0: i32) -> (i32, i32) {
    %c0_i32 = arith.constant 0 : i32
    %c0_i32_0 = arith.constant 0 : i32
    return %arg0, %c0_i32 : i32, i32
  }
}

</mosaic_0001>

<bundles_post_ra>
// kernel: tpu_custom_call.1
= control target key start
LH: loop header
LB: loop body
LE: loop exit
PB: predicated region body
PF: predicated region fallthrough
CT: control target
= control target key end

     0   :  { %12 = vsyncpa [#allocation3], 0  ;;  %s611_s0 = inlined_call_operand.hbm [shape: bf16[8,32], index: 0, kind: input, shape index: {}]   ;;  %s612_s1 = inlined_call_operand.hbm [shape: bf16[32,64], index: 1, kind: input, shape index: {}]   ;;  %s613_s2 = inlined_call_operand.vmem [shape: f32[1,64], index: 2, kind: input, shape index: {}]   ;;  %s614_s3 = inlined_call_operand.hbm [shape: bf16[64,64], index: 3, kind: input, shape index: {}]   ;;  %s615_s4 = inlined_call_operand.vmem [shape: f32[1,64], index: 4, kind: input, shape index: {}]   ;;  %s616_s5 = inlined_call_operand.hbm [shape: bf16[64,128], index: 5, kind: input, shape index: {}]   ;;  %s617_s6 = inlined_call_operand.vmem [shape: f32[1,128], index: 6, kind: input, shape index: {}]   ;;  %s618_s7 = inlined_call_operand.hbm [shape: f32[8,128], index: 7, kind: output, shape index: {}]  }
   0x1   :  { %13 = vsyncpa [#allocation6], 0 }
   0x2   :  { %14 = vsyncpa [#allocation9], 0 }
   0x3   :  { %15 = vsyncpa [#allocation4], 0  ;;  %s524_s24 = smov [#allocation5]  }
   0x4   :  { %s31_s25 = sshll.u32 %s524_s24, 4  ;;  %s32_s25 = int_to_ptr.vmem [resolvable:$true] %s31_s25 }
   0x5   :  { %s424_s26 = scalar_lea.vmem %s32_s25, 256  ;;  %p429_p1 = scmp.lt.s32.totalorder %s32_s25, %s32_s25 }
   0x6   :  { %p425_p0 = scmp.ne.s32.totalorder %s32_s25, %s424_s26  ;;  %p430_p2 = scmp.lt.s32.totalorder %s424_s26, %s424_s26 }
   0x8   :  { %p431_p3 = por %p430_p2, %p429_p1 }
   0xa   :  { %p432_p4 = pnand %p431_p3, %p425_p0 }
   0xc   :  { %435 = shalt.err (!%p432_p4)
}
   0xd   :  { %s525_s27 = smov 64   ;;  %s526_s28 = smov 4  }
   0xe   :  { %37 = dma.hbm_to_vmem [thread:$0]  %s612_s1, 256, %s32_s25, [#allocation6], %s525_s27, %s525_s27, %s526_s28  }
   0xf   :  { %s527_s8 = smov [#allocation2]   ;;  %s528_s10 = smov [#allocation7]  }
  0x10   :  { %s22_s9 = sshll.u32 %s527_s8, 4  ;;  %s45_s11 = sshll.u32 %s528_s10, 4  ;;  %s23_s9 = int_to_ptr.vmem [resolvable:$true] %s22_s9  ;;  %s46_s11 = int_to_ptr.vmem [resolvable:$true] %s45_s11 }
  0x11   :  { %s444_s12 = scalar_lea.vmem %s23_s9, 64  ;;  %p449_p6 = scmp.lt.s32.totalorder %s23_s9, %s23_s9 }
  0x12   :  { %p445_p5 = scmp.ne.s32.totalorder %s23_s9, %s444_s12  ;;  %p450_p7 = scmp.lt.s32.totalorder %s444_s12, %s444_s12 }
  0x14   :  { %p451_p8 = por %p450_p7, %p449_p6 }
  0x16   :  { %p452_p9 = pnand %p451_p8, %p445_p5 }
  0x18   :  { %455 = shalt.err (!%p452_p9)
}
  0x19   :  { %25 = dma.hbm_to_vmem [thread:$0]  %s611_s0, 64, %s23_s9, [#allocation3]  }
  0x1a   :  { %s464_s15 = scalar_lea.vmem %s46_s11, 512  ;;  %p469_p11 = scmp.lt.s32.totalorder %s46_s11, %s46_s11 }
  0x1b   :  { %p465_p10 = scmp.ne.s32.totalorder %s46_s11, %s464_s15  ;;  %p470_p12 = scmp.lt.s32.totalorder %s464_s15, %s464_s15 }
  0x1d   :  { %p471_p13 = por %p470_p12, %p469_p11 }
  0x1f   :  { %p472_p0 = pnand %p471_p13, %p465_p10 }
  0x21   :  { %475 = shalt.err (!%p472_p0)
}
  0x22   :  { %51 = dma.hbm_to_vmem [thread:$0]  %s614_s3, 512, %s46_s11, [#allocation6], %s525_s27, %s525_s27, %s526_s28  }
  0x23   :  { %s529_s17 = smov [#allocation8]  }
  0x24   :  { %s59_s18 = sshll.u32 %s529_s17, 4  ;;  %s60_s18 = int_to_ptr.vmem [resolvable:$true] %s59_s18 }
  0x25   :  { %s484_s19 = scalar_lea.vmem %s60_s18, 512  ;;  %p489_p2 = scmp.lt.s32.totalorder %s60_s18, %s60_s18 }
  0x26   :  { %p485_p1 = scmp.ne.s32.totalorder %s60_s18, %s484_s19  ;;  %p490_p3 = scmp.lt.s32.totalorder %s484_s19, %s484_s19 }
  0x28   :  { %p491_p4 = por %p490_p3, %p489_p2 }
  0x2a   :  { %p492_p5 = pnand %p491_p4, %p485_p1 }
  0x2c   :  { %495 = shalt.err (!%p492_p5)
}
  0x2d   :  { %65 = dma.hbm_to_vmem [thread:$0]  %s616_s5, 512, %s60_s18, [#allocation9], %s525_s27, %s525_s27, %s526_s28  }
  0x2e   :  { %516 = dma.done.wait [#allocation3], 64  }
  0x2f   :  { %517 = vsyncadd [#allocation3], 4294967232 }
  0x30   :  { %518 = dma.done.wait [#allocation6], 768  }
  0x31   :  { %519 = vsyncadd [#allocation6], 4294966528 }
  0x32   :  { %520 = dma.done.wait [#allocation9], 512  }
  0x33   :  { %521 = vsyncadd [#allocation9], 4294966784  ;;  %v530_v0 = vmov 0.0   ;;  %vm531_vm0 = vmmov 0   ;;  %v406_v1 = vld [vmem:[#allocation5 + $0x8] sm:$0xff]   ;;  %v407_v2 = vld [vmem:[#allocation5] sm:$0xff]  }
  0x34   :  { %365 = vmatprep.subr.bf16.mxu0 %v530_v0  ;;  %369 = vmatprep.mubr.msk.bf16.mxu0 %vm531_vm0, %v530_v0  ;;  %v408_v3 = vld [vmem:[#allocation7 + $0x18] sm:$0xff]   ;;  %v81_v4 = vld [vmem:[#allocation2] sm:$0xf]  ;;  %vm105_vm1 = vcmask 261120   ;;  %v409_v5 = vld [vmem:[#allocation7 + $0x10] sm:$0xff]   ;;  %vm190_vm2 = vcmask 523264  }
  0x35   :  { %373 = vmatprep.subr.bf16.mxu1 %v530_v0  ;;  %381 = vmatprep.mubr.msk.bf16.mxu1 %vm531_vm0, %v530_v0  ;;  %v410_v6 = vld [vmem:[#allocation7 + $0x8] sm:$0xff]   ;;  %v411_v7 = vld [vmem:[#allocation7] sm:$0xff]   ;;  %v412_v8 = vld [vmem:[#allocation8 + $0x18] sm:$0xff]   ;;  %s532_s24 = smov [#allocation10]  }
  0x36   :  { %366 = vmatpush3.bf16.msra.mxu0 %v406_v1  ;;  %374 = vmatpush3.bf16.msra.mxu1 %v408_v3  ;;  %v413_v9 = vld [vmem:[#allocation8 + $0x10] sm:$0xff]   ;;  %v336_v10 = vld [vmem:[%s613_s2] ss:$0 sm:$0xff]  ;;  %v415_v19 = vld [vmem:[#allocation8] sm:$0xff]   ;;  %s325_s25 = sshll.u32 %s532_s24, 4  ;;  %s326_s25 = int_to_ptr.vmem [resolvable:$true] %s325_s25 }
  0x37   :  { %367 = vmatprep.subr.bf16.mxu0 %v530_v0  ;;  %375 = vmatprep.subr.bf16.mxu1 %v530_v0  ;;  %v414_v18 = vld [vmem:[#allocation8 + $0x8] sm:$0xff]   ;;  %p501_p7 = scmp.lt.s32.totalorder %s326_s25, %s326_s25 }
  0x38   :  { %v340_v20 = vld [vmem:[%s615_s4] ss:$0 sm:$0xff]  ;;  %s496_s4 = scalar_lea.vmem %s326_s25, 128 }
  0x39   :  { %v346_v28 = vld [vmem:[%s617_s6] ss:$0 sm:$0xff]  ;;  %p497_p6 = scmp.ne.s32.totalorder %s326_s25, %s496_s4  ;;  %p502_p8 = scmp.lt.s32.totalorder %s496_s4, %s496_s4 }
  0x3a   :  { %368 = vmatpush3.bf16.msra.mxu0 %v407_v2  ;;  %376 = vmatpush3.bf16.msra.mxu1 %v409_v5 }
  0x3b   :  { %385 = vmatprep.subr.bf16.mxu0 %v530_v0  ;;  %377 = vmatprep.subr.bf16.mxu1 %v530_v0  ;;  %p503_p9 = por %p502_p8, %p501_p7 }
  0x3d   :  { %370 = vmatmul.mubr.msk.bf16.vlgmr.msra.gmra.mxu0 %vm105_vm1, %v81_v4  ;;  %p504_p10 = pnand %p503_p9, %p497_p6 }
  0x3e   :  { %393 = vmatprep.mubr.msk.bf16.mxu0 %vm531_vm0, %v530_v0  ;;  %378 = vmatpush3.bf16.msra.mxu1 %v410_v6 }
  0x3f   :  { %379 = vmatprep.subr.bf16.mxu1 %v530_v0  ;;  %386 = vmatpush3.bf16.msra.mxu0 %v412_v8 }
  0x40   :  { %387 = vmatprep.subr.bf16.mxu0 %v530_v0 }
  0x42   :  { %380 = vmatpush3.bf16.msra.mxu1 %v411_v7 }
  0x43   :  { %388 = vmatpush3.bf16.msra.mxu0 %v413_v9 }
  0x44   :  { %389 = vmatprep.subr.bf16.mxu0 %v530_v0 }
  0x47   :  { %390 = vmatpush3.bf16.msra.mxu0 %v414_v18 }
  0x48   :  { %391 = vmatprep.subr.bf16.mxu0 %v530_v0 }
  0x4b   :  { %392 = vmatpush3.bf16.msra.mxu0 %v415_v19 }
  0xfd   :  { %v143_v11 = vpop.f32.mrf.mxu0 }
  0xfe   :  { %v144_v12 = vadd.f32 %v336_v10, %v143_v11 }
  0xff   :  { %v371_v13 = vpop.f32.mrf.mxu0 }
 0x100   :  { %v149_v14 = vmax.f32 %v144_v12, 0.0 }
 0x101   :  { %v146_v15 = vpop.f32.mrf.mxu0 }
 0x102   :  { %v150_v16 = vpack.c.bf16 %v149_v14, %v149_v14 }
 0x103   :  { %v372_v17 = vpop.f32.mrf.mxu0 }
 0x104   :  { %382 = vmatmul.mubr.msk.bf16.vlgmr.msra.gmra.mxu1 %vm190_vm2, %v150_v16 }
 0x1c4   :  { %v228_v21 = vpop.f32.mrf.mxu1 }
 0x1c5   :  { %v229_v22 = vadd.f32 %v340_v20, %v228_v21 }
 0x1c6   :  { %v383_v23 = vpop.f32.mrf.mxu1 }
 0x1c7   :  { %v234_v24 = vmax.f32 %v229_v22, 0.0 }
 0x1c8   :  { %v231_v25 = vpop.f32.mrf.mxu1 }
 0x1c9   :  { %v235_v26 = vpack.c.bf16 %v234_v24, %v234_v24 }
 0x1ca   :  { %v384_v27 = vpop.f32.mrf.mxu1 }
 0x1cb   :  { %394 = vmatmul.mubr.msk.bf16.vlgmr.msra.gmra.mxu0 %vm190_vm2, %v235_v26 }
 0x28b   :  { %v312_v29 = vpop.f32.mrf.mxu0 }
 0x28c   :  { %v313_v30 = vadd.f32 %v346_v28, %v312_v29 }
 0x28d   :  { %v395_v31 = vpop.f32.mrf.mxu0 }
 0x28e   :  { %318 = vst [vmem:[#allocation10] sm:$0xff] %v313_v30 }
 0x28f   :  { %v315_v32 = vpop.f32.mrf.mxu0 }
 0x290   :  { %507 = shalt.err (!%p504_p10)
}
 0x291   :  { %328 = dma.vmem_to_hbm [thread:$0]  %s326_s25, 128, %s618_s7, [#allocation4]   ;;  %v396_v33 = vpop.f32.mrf.mxu0 }
 0x292   :  { %522 = dma.done.wait [#allocation4], 128  }
 0x293   :  { %523 = vsyncadd [#allocation4], 4294967168 }
 0x294   :  { %332 = vsyncpa [#allocation3], 1 }
 0x295   :  { %333 = vsyncpa [#allocation6], 1 }
 0x296   :  { %334 = vsyncpa [#allocation9], 1 }
 0x297   :  { %335 = vsyncpa [#allocation4], 1 }

</bundles_post_ra>
